<compile_context>
chip_gen: v5e
topology: v5e:2x2
jax: 0.10.0
libtpu: 0.0.40
codegen_flags: <defaults>
</compile_context>

<pallas_src>
import functools

import jax
import jax.numpy as jnp
from jax import lax
from jax.experimental import pallas as pl
from jax.experimental.pallas import tpu as pltpu


_MIB = 1024 * 1024
_STEP_BYTE_TARGET = 2 * _MIB       # aim for >= ~2 MiB of HBM traffic per grid step
_POOL_MATRIX_LIMIT = 8 * _MIB      # max bytes for each constant pool/expand matrix


def _cdiv(a, b):
    return -(-a // b)


# --------------------------------------------------------------------------- #
# Per-generation VMEM sizing
# --------------------------------------------------------------------------- #
@functools.lru_cache(maxsize=None)
def _vmem_plan():
    """Returns (tile-sizing budget, compiler vmem limit, prefer_even_grid_steps)."""
    vmem = None
    try:
        info = pltpu.get_tpu_info()
        vmem = int(getattr(info, "vmem_capacity_bytes", 0)) or None
    except Exception:
        vmem = None
    if vmem is None:
        vmem = 64 * _MIB                       # conservative default (v7x-sized)
    if vmem >= 100 * _MIB:                     # v5e / v6e: 128 MiB physical, 1 TensorCore
        return 96 * _MIB, 112 * _MIB, False
    # v7x-sized VMEM (64 MiB physical, 2 TensorCores): leave compiler headroom and
    # prefer an even number of grid steps so the 'parallel' axis splits evenly.
    budget = max(16 * _MIB, min(44 * _MIB, (vmem * 11) // 16))
    limit = max(24 * _MIB, min(56 * _MIB, (vmem * 7) // 8))
    return budget, limit, True


# --------------------------------------------------------------------------- #
# Kernels
# --------------------------------------------------------------------------- #
def _ffn_gate_flat_kernel(inv_t, x_ref, pool_ref, w1t_ref, b1_ref, w2t_ref,
                          b2_ref, expand_ref, o_ref):
    """Lane-dense path: x block is (B_blk, C*T) in the caller's dtype."""
    x = x_ref[...]                                                          # native dtype
    # Per-channel time sum as an MXU dot against a constant block-diagonal 0/1
    # matrix (exact); accumulate in f32 and apply 1/T as an f32 scalar after.
    x_mean = jnp.dot(x, pool_ref[...], preferred_element_type=jnp.float32) * inv_t
    h = jnp.dot(x_mean, w1t_ref[...], preferred_element_type=jnp.float32) + b1_ref[...]
    h = jnp.maximum(h, 0.0)
    s = jax.nn.sigmoid(
        jnp.dot(h, w2t_ref[...], preferred_element_type=jnp.float32) + b2_ref[...])
    # Broadcast the gate back to (Bb, C*T) via a one-hot expansion dot (exact in
    # the activation dtype): no full-block f32 copies and no lane<->sublane
    # relayout; the final multiply stays in the native dtype.
    s_full = jnp.dot(s.astype(o_ref.dtype), expand_ref[...])               # (Bb, C*T)
    o_ref[...] = x * s_full


def _ffn_gate_3d_kernel(inv_t, x_ref, w1t_ref, b1_ref, w2t_ref, b2_ref, o_ref):
    """General path: x block is (B_blk, C, T); lane-dense whenever T % 128 == 0."""
    x = x_ref[...]
    x_mean = jnp.sum(x.astype(jnp.float32), axis=-1) * inv_t               # (Bb, C) f32
    h = jnp.dot(x_mean, w1t_ref[...], preferred_element_type=jnp.float32) + b1_ref[...]
    h = jnp.maximum(h, 0.0)
    s = jax.nn.sigmoid(
        jnp.dot(h, w2t_ref[...], preferred_element_type=jnp.float32) + b2_ref[...])
    o_ref[...] = x * s.astype(o_ref.dtype)[:, :, None]


def _gate_reduce_kernel(inv_t, t_total, t_blk, x_ref, w1t_ref, b1_ref, w2t_ref,
                        b2_ref, s_ref, acc_ref):
    """Two-pass, pass A: accumulate the per-channel time sum over T tiles, emit gate."""
    ti = pl.program_id(1)

    @pl.when(ti == 0)
    def _():
        acc_ref[...] = jnp.zeros_like(acc_ref)

    xf = x_ref[...].astype(jnp.float32)                                    # (Bb, C, t_blk)
    if t_total % t_blk != 0:
        # Mask the ragged T tail so padded lanes don't pollute the sum.
        lane = lax.broadcasted_iota(jnp.int32, xf.shape, 2)
        xf = jnp.where(ti * t_blk + lane < t_total, xf, 0.0)
    acc_ref[...] += jnp.sum(xf, axis=-1)

    @pl.when(ti == pl.num_programs(1) - 1)
    def _():
        x_mean = acc_ref[...] * inv_t
        h = jnp.dot(x_mean, w1t_ref[...], preferred_element_type=jnp.float32) + b1_ref[...]
        h = jnp.maximum(h, 0.0)
        s_ref[...] = jax.nn.sigmoid(
            jnp.dot(h, w2t_ref[...], preferred_element_type=jnp.float32) + b2_ref[...])


def _scale_kernel(x_ref, s_ref, o_ref):
    """Two-pass, pass B: lane-dense, T-tiled elementwise gating."""
    o_ref[...] = x_ref[...] * s_ref[...].astype(o_ref.dtype)[:, :, None]


# --------------------------------------------------------------------------- #
# Block-size selection helpers
# --------------------------------------------------------------------------- #
def _flat_vmem_estimate(b_blk, *, C, T, d_ff, io_itemsize):
    blk = b_blk * C * T
    est = 2 * 2 * blk * io_itemsize               # double-buffered x-in and out blocks
    est += blk * (io_itemsize + 4)                # gate-broadcast block + f32 headroom
    est += (2 * C * d_ff + C + d_ff) * 4          # resident gate weights/biases (f32)
    est += 2 * C * T * C * io_itemsize            # resident pool + expand constants
    return est


def _3d_vmem_estimate(b_blk, *, C, T, d_ff, io_itemsize):
    blk = b_blk * C * T
    return 2 * 2 * blk * io_itemsize + blk * 4 + (2 * C * d_ff + C + d_ff) * 4


def _gate_vmem_estimate(b_blk, *, C, t_blk, d_ff, io_itemsize):
    blk = b_blk * C * t_blk
    return (2 * blk * io_itemsize + blk * 4 + 3 * b_blk * C * 4
            + (2 * C * d_ff + C + d_ff) * 4)


def _scale_vmem_estimate(b_blk, *, C, t_blk, io_itemsize):
    blk = b_blk * C * t_blk
    return 2 * 2 * blk * io_itemsize + blk * io_itemsize + 2 * b_blk * C * 4


def _aligned_candidates(B, align):
    """Sublane-aligned leading-block sizes (plus full B, which is always legal)."""
    if B <= align:
        return [B]
    cands = list(range(align, (B // align) * align + 1, align))
    if B not in cands:
        cands.append(B)
    return cands


def _choose_block(cands, est_fn, budget, B, row_bytes, prefer_even_steps):
    """Pick the batch-rows-per-step: biggest block that fits VMEM, but prefer >= 2
    (even, on v7x) grid steps as long as each step still moves >= the byte target."""
    fitting = [m for m in cands if est_fn(m) <= budget]
    if not fitting:
        return None
    b_max = max(fitting)
    good = [m for m in fitting
            if m * row_bytes >= _STEP_BYTE_TARGET and _cdiv(B, m) >= 2]
    if prefer_even_steps:
        even = [m for m in good if _cdiv(B, m) % 2 == 0]
        if even:
            return max(even)
    if good:
        return max(good)
    return b_max


# --------------------------------------------------------------------------- #
# Wrapper
# --------------------------------------------------------------------------- #
def positionwise_feed_forward(x, w1, b1, w2, b2, *, _force_two_pass=False):
    """x: (B, d_model, T). w1: (d_ff, d_model), b1: (d_ff,), w2: (d_model, d_ff), b2: (d_model,)."""
    B, C, T = x.shape
    d_ff = w1.shape[0]
    out_dtype = x.dtype                     # keep the caller's activation dtype over HBM
    itemsize = jnp.dtype(out_dtype).itemsize
    CT = C * T
    inv_t = 1.0 / T

    budget, vmem_limit, prefer_even = _vmem_plan()

    # Small gate parameters: pre-transpose, keep in f32 (negligible VMEM).
    w1t = jnp.asarray(w1, jnp.float32).T                     # (C, d_ff)
    w2t = jnp.asarray(w2, jnp.float32).T                     # (d_ff, C)
    b1r = jnp.asarray(b1, jnp.float32).reshape(1, d_ff)
    b2r = jnp.asarray(b2, jnp.float32).reshape(1, C)
    param_bytes = (2 * C * d_ff + C + d_ff) * 4

    weight_specs = [
        pl.BlockSpec((C, d_ff), lambda *a: (0, 0)),          # W1^T (resident)
        pl.BlockSpec((1, d_ff), lambda *a: (0, 0)),          # b1
        pl.BlockSpec((d_ff, C), lambda *a: (0, 0)),          # W2^T
        pl.BlockSpec((1, C), lambda *a: (0, 0)),             # b2
    ]

    # ------------------ lane-dense flattened path ------------------------- #
    sub = max(8, 32 // itemsize)            # native sublane tile: 8 (f32), 16 (bf16)
    use_flat = (
        not _force_two_pass
        and T % 128 != 0                    # 3-D blocks would not be lane-dense
        and CT % 128 == 0                   # flattened last dim is a multiple of 128
        and CT * C * itemsize <= _POOL_MATRIX_LIMIT
    )
    b_flat = None
    if use_flat:
        est = functools.partial(_flat_vmem_estimate, C=C, T=T, d_ff=d_ff,
                                io_itemsize=itemsize)
        b_flat = _choose_block(_aligned_candidates(B, sub), est, budget,
                               B, 2 * CT * itemsize, prefer_even)
        use_flat = b_flat is not None

    if use_flat:
        x_flat = x.reshape(B, CT)           # contiguous dims merge: no copy
        ch = jnp.arange(C, dtype=jnp.int32)
        grp = jnp.repeat(ch, T)                                            # (C*T,)
        # Exact 0/1 constants in the activation dtype (1/T applied in f32 in-kernel).
        pool = (grp[:, None] == ch[None, :]).astype(out_dtype)             # (C*T, C)
        expand = (ch[:, None] == grp[None, :]).astype(out_dtype)           # (C, C*T)

        out_flat = pl.pallas_call(
            functools.partial(_ffn_gate_flat_kernel, inv_t),
            out_shape=jax.ShapeDtypeStruct((B, CT), out_dtype),
            grid=(_cdiv(B, b_flat),),
            in_specs=[pl.BlockSpec((b_flat, CT), lambda b: (b, 0)),        # x rows
                      pl.BlockSpec((CT, C), lambda b: (0, 0))]             # pool matrix
                     + weight_specs
                     + [pl.BlockSpec((C, CT), lambda b: (0, 0))],          # expand matrix
            out_specs=pl.BlockSpec((b_flat, CT), lambda b: (b, 0)),
            compiler_params=pltpu.CompilerParams(
                dimension_semantics=("parallel",),
                vmem_limit_bytes=vmem_limit),
            cost_estimate=pl.CostEstimate(
                flops=4 * B * C * CT + 4 * B * C * d_ff + B * CT,
                transcendentals=B * C,
                bytes_accessed=2 * B * CT * itemsize + 2 * C * CT * itemsize + param_bytes),
        )(x_flat, pool, w1t, b1r, w2t, b2r, expand)
        return out_flat.reshape(B, C, T)

    # ------------------ general 3-D single-pass path ---------------------- #
    if not _force_two_pass:
        est = functools.partial(_3d_vmem_estimate, C=C, T=T, d_ff=d_ff,
                                io_itemsize=itemsize)
        b_3d = _choose_block(list(range(1, B + 1)), est, budget,
                             B, 2 * CT * itemsize, prefer_even)
        lane_dense_3d = (T % 128 == 0) or (T < 128)
        if b_3d is not None and lane_dense_3d:
            return pl.pallas_call(
                functools.partial(_ffn_gate_3d_kernel, inv_t),
                out_shape=jax.ShapeDtypeStruct((B, C, T), out_dtype),
                grid=(_cdiv(B, b_3d),),
                in_specs=[pl.BlockSpec((b_3d, C, T), lambda b: (b, 0, 0))] + weight_specs,
                out_specs=pl.BlockSpec((b_3d, C, T), lambda b: (b, 0, 0)),
                compiler_params=pltpu.CompilerParams(
                    dimension_semantics=("parallel",),
                    vmem_limit_bytes=vmem_limit),
                cost_estimate=pl.CostEstimate(
                    flops=2 * B * CT + 4 * B * C * d_ff,
                    transcendentals=B * C,
                    bytes_accessed=2 * B * CT * itemsize + param_bytes),
            )(x, w1t, b1r, w2t, b2r)

    # ------------------ two-pass fallback (gate then scale) ---------------- #
    # Used when the (C, T) slab would blow VMEM or when T >= 128 but is not a
    # multiple of 128 (avoids masked partial stores on every row).
    if T >= 128:
        t_blk = min((T // 128) * 128, 2048)
    else:
        # TODO(synk): if T < 128 AND a single-row (C, T) slab still exceeds VMEM,
        # a channel-tiled variant would be needed; t_blk = T is best effort here.
        t_blk = T

    cands = _aligned_candidates(B, 8)       # gate array is f32 -> 8-sublane alignment

    est_a = functools.partial(_gate_vmem_estimate, C=C, t_blk=t_blk, d_ff=d_ff,
                              io_itemsize=itemsize)
    b_a = _choose_block(cands, est_a, budget, B, C * t_blk * itemsize, prefer_even)
    b_a = b_a if b_a is not None else min(cands)
    s = pl.pallas_call(
        functools.partial(_gate_reduce_kernel, inv_t, T, t_blk),
        out_shape=jax.ShapeDtypeStruct((B, C), jnp.float32),
        grid=(_cdiv(B, b_a), _cdiv(T, t_blk)),
        in_specs=[pl.BlockSpec((b_a, C, t_blk), lambda b, t: (b, 0, t))] + weight_specs,
        out_specs=pl.BlockSpec((b_a, C), lambda b, t: (b, 0)),
        scratch_shapes=[pltpu.VMEM((b_a, C), jnp.float32)],
        compiler_params=pltpu.CompilerParams(
            dimension_semantics=("parallel", "arbitrary"),
            vmem_limit_bytes=vmem_limit),
        cost_estimate=pl.CostEstimate(
            flops=2 * B * CT + 4 * B * C * d_ff,
            transcendentals=B * C,
            bytes_accessed=B * CT * itemsize + B * C * 4 + param_bytes),
    )(x, w1t, b1r, w2t, b2r)

    est_b = functools.partial(_scale_vmem_estimate, C=C, t_blk=t_blk,
                              io_itemsize=itemsize)
    b_b = _choose_block(cands, est_b, budget, B, 2 * C * t_blk * itemsize, prefer_even)
    b_b = b_b if b_b is not None else min(cands)
    return pl.pallas_call(
        _scale_kernel,
        out_shape=jax.ShapeDtypeStruct((B, C, T), out_dtype),
        grid=(_cdiv(B, b_b), _cdiv(T, t_blk)),
        in_specs=[pl.BlockSpec((b_b, C, t_blk), lambda b, t: (b, 0, t)),
                  pl.BlockSpec((b_b, C), lambda b, t: (b, 0))],
        out_specs=pl.BlockSpec((b_b, C, t_blk), lambda b, t: (b, 0, t)),
        compiler_params=pltpu.CompilerParams(
            dimension_semantics=("parallel", "parallel"),
            vmem_limit_bytes=vmem_limit),
        cost_estimate=pl.CostEstimate(
            flops=B * CT,
            transcendentals=0,
            bytes_accessed=2 * B * CT * itemsize + B * C * 4),
    )(x, s)


# --------------------------------------------------------------------------- #
# Reference and self-test
# --------------------------------------------------------------------------- #
def reference(x, w1, b1, w2, b2):
    x_mean = jnp.mean(x, axis=2)                               # (B, C)
    h = jnp.maximum(x_mean @ w1.T + b1, 0.0)                   # (B, d_ff)
    s = jax.nn.sigmoid(h @ w2.T + b2)                          # (B, C)
    return x * s[..., None]


if __name__ == "__main__":
    B, d_model, T, d_ff = 32, 32, 16, 64

    key = jax.random.PRNGKey(0)
    kx, k1, k2, k3, k4 = jax.random.split(key, 5)

    w1 = jax.random.normal(k1, (d_ff, d_model), dtype=jnp.float32) * 0.1
    b1 = jax.random.normal(k2, (d_ff,), dtype=jnp.float32) * 0.1
    w2 = jax.random.normal(k3, (d_model, d_ff), dtype=jnp.float32) * 0.1
    b2 = jax.random.normal(k4, (d_model,), dtype=jnp.float32) * 0.1

    # 1) f32 activations, T=16 -> lane-dense flattened path (C*T = 512).
    x32 = jax.random.normal(kx, (B, d_model, T), dtype=jnp.float32)
    out32 = jax.block_until_ready(positionwise_feed_forward(x32, w1, b1, w2, b2))
    ref32 = reference(x32, w1, b1, w2, b2)
    assert out32.shape == (B, d_model, T) and out32.dtype == jnp.float32
    assert jnp.allclose(out32, ref32, atol=1e-5, rtol=1e-5), "f32 mismatch vs reference"

    # 2) bf16 activation stream (HBM I/O and gating multiply stay bf16; gate math f32).
    xbf = x32.astype(jnp.bfloat16)
    outbf = jax.block_until_ready(positionwise_feed_forward(xbf, w1, b1, w2, b2))
    refbf = reference(xbf.astype(jnp.float32), w1, b1, w2, b2)
    assert outbf.dtype == jnp.bfloat16
    assert jnp.allclose(outbf.astype(jnp.float32), refbf, atol=2e-2, rtol=2e-2), "bf16 mismatch"

    # 3) T = 128 -> natural 3-D lane-dense single-pass path.
    x3 = jax.random.normal(kx, (B, d_model, 128), dtype=jnp.bfloat16)
    out3 = jax.block_until_ready(positionwise_feed_forward(x3, w1, b1, w2, b2))
    ref3 = reference(x3.astype(jnp.float32), w1, b1, w2, b2)
    assert out3.dtype == jnp.bfloat16
    assert jnp.allclose(out3.astype(jnp.float32), ref3, atol=2e-2, rtol=2e-2), "3-D path mismatch"

    # 4) Forced two-pass fallback (T-tiled gate reduction + lane-dense scale),
    #    with a ragged T tile (160 = 128 + 32) and an unaligned batch (B=10).
    x4 = jax.random.normal(kx, (10, d_model, 160), dtype=jnp.bfloat16)
    out4 = jax.block_until_ready(
        positionwise_feed_forward(x4, w1, b1, w2, b2, _force_two_pass=True))
    ref4 = reference(x4.astype(jnp.float32), w1, b1, w2, b2)
    assert out4.shape == (10, d_model, 160) and out4.dtype == jnp.bfloat16
    assert jnp.allclose(out4.astype(jnp.float32), ref4, atol=2e-2, rtol=2e-2), "two-pass mismatch"

    print("KERNEL_OK")
</pallas_src>

<mosaic_0001>
module attributes {stable_mosaic.version = 11 : i64} {
  func.func @_ffn_gate_flat_kernel(%arg0: i32, %arg1: memref<32x512xf32, #tpu.memory_space<vmem>>, %arg2: memref<512x32xf32, #tpu.memory_space<vmem>>, %arg3: memref<32x64xf32, #tpu.memory_space<vmem>>, %arg4: memref<1x64xf32, #tpu.memory_space<vmem>>, %arg5: memref<64x32xf32, #tpu.memory_space<vmem>>, %arg6: memref<1x32xf32, #tpu.memory_space<vmem>>, %arg7: memref<32x512xf32, #tpu.memory_space<vmem>>, %arg8: memref<32x512xf32, #tpu.memory_space<vmem>>) attributes {dimension_semantics = [#tpu.dimension_semantics<parallel>], iteration_bounds = array<i64: 1>, scalar_prefetch = 0 : i64, scratch_operands = 0 : i64, tpu.core_type = #tpu.core_type<tc>, window_params = [{transform_indices = @transform_0, window_bounds = array<i64: 32, 512>}, {pipeline_mode = #tpu.pipeline_mode<synchronous>, transform_indices = @transform_1, window_bounds = array<i64: 512, 32>}, {pipeline_mode = #tpu.pipeline_mode<synchronous>, transform_indices = @transform_2, window_bounds = array<i64: 32, 64>}, {pipeline_mode = #tpu.pipeline_mode<synchronous>, transform_indices = @transform_3, window_bounds = array<i64: 1, 64>}, {pipeline_mode = #tpu.pipeline_mode<synchronous>, transform_indices = @transform_4, window_bounds = array<i64: 64, 32>}, {pipeline_mode = #tpu.pipeline_mode<synchronous>, transform_indices = @transform_5, window_bounds = array<i64: 1, 32>}, {pipeline_mode = #tpu.pipeline_mode<synchronous>, transform_indices = @transform_6, window_bounds = array<i64: 32, 512>}, {transform_indices = @transform_7, window_bounds = array<i64: 32, 512>}]} {
    %c0 = arith.constant 0 : index
    %c0_0 = arith.constant 0 : index
    %0 = vector.load %arg1[%c0, %c0_0] : memref<32x512xf32, #tpu.memory_space<vmem>>, vector<32x512xf32>
    %c0_1 = arith.constant 0 : index
    %c0_2 = arith.constant 0 : index
    %1 = vector.load %arg2[%c0_1, %c0_2] : memref<512x32xf32, #tpu.memory_space<vmem>>, vector<512x32xf32>
    %cst = arith.constant dense<0.000000e+00> : vector<32x32xf32>
    %2 = tpu.matmul %0, %1, %cst {dimension_numbers = #tpu.dot_dimension_numbers<[1], [0], [0], [1], [0, 0, 1, 1], [], []>} : vector<32x512xf32>, vector<512x32xf32>, vector<32x32xf32> -> vector<32x32xf32>
    %cst_3 = arith.constant 6.250000e-02 : f32
    %3 = vector.broadcast %cst_3 : f32 to vector<32x32xf32>
    %4 = arith.mulf %2, %3 : vector<32x32xf32>
    %c0_4 = arith.constant 0 : index
    %c0_5 = arith.constant 0 : index
    %5 = vector.load %arg3[%c0_4, %c0_5] : memref<32x64xf32, #tpu.memory_space<vmem>>, vector<32x64xf32>
    %cst_6 = arith.constant dense<0.000000e+00> : vector<32x64xf32>
    %6 = tpu.matmul %4, %5, %cst_6 {dimension_numbers = #tpu.dot_dimension_numbers<[1], [0], [0], [1], [0, 0, 1, 1], [], []>} : vector<32x32xf32>, vector<32x64xf32>, vector<32x64xf32> -> vector<32x64xf32>
    %c0_7 = arith.constant 0 : index
    %c0_8 = arith.constant 0 : index
    %7 = vector.load %arg4[%c0_7, %c0_8] : memref<1x64xf32, #tpu.memory_space<vmem>>, vector<1x64xf32>
    %8 = vector.broadcast %7 : vector<1x64xf32> to vector<32x64xf32>
    %9 = arith.addf %6, %8 : vector<32x64xf32>
    %cst_9 = arith.constant 0.000000e+00 : f32
    %10 = vector.broadcast %cst_9 : f32 to vector<32x64xf32>
    %11 = arith.maximumf %9, %10 : vector<32x64xf32>
    %c0_10 = arith.constant 0 : index
    %c0_11 = arith.constant 0 : index
    %12 = vector.load %arg5[%c0_10, %c0_11] : memref<64x32xf32, #tpu.memory_space<vmem>>, vector<64x32xf32>
    %cst_12 = arith.constant dense<0.000000e+00> : vector<32x32xf32>
    %13 = tpu.matmul %11, %12, %cst_12 {dimension_numbers = #tpu.dot_dimension_numbers<[1], [0], [0], [1], [0, 0, 1, 1], [], []>} : vector<32x64xf32>, vector<64x32xf32>, vector<32x32xf32> -> vector<32x32xf32>
    %c0_13 = arith.constant 0 : index
    %c0_14 = arith.constant 0 : index
    %14 = vector.load %arg6[%c0_13, %c0_14] : memref<1x32xf32, #tpu.memory_space<vmem>>, vector<1x32xf32>
    %15 = vector.broadcast %14 : vector<1x32xf32> to vector<32x32xf32>
    %16 = arith.addf %13, %15 : vector<32x32xf32>
    %17 = arith.negf %16 : vector<32x32xf32>
    %18 = math.exp %17 : vector<32x32xf32>
    %cst_15 = arith.constant 1.000000e+00 : f32
    %19 = vector.broadcast %cst_15 : f32 to vector<32x32xf32>
    %20 = arith.addf %19, %18 : vector<32x32xf32>
    %21 = arith.divf %19, %20 : vector<32x32xf32>
    %c0_16 = arith.constant 0 : index
    %c0_17 = arith.constant 0 : index
    %22 = vector.load %arg7[%c0_16, %c0_17] : memref<32x512xf32, #tpu.memory_space<vmem>>, vector<32x512xf32>
    %cst_18 = arith.constant dense<0.000000e+00> : vector<32x512xf32>
    %23 = tpu.matmul %21, %22, %cst_18 {dimension_numbers = #tpu.dot_dimension_numbers<[1], [0], [0], [1], [0, 0, 1, 1], [], []>} : vector<32x32xf32>, vector<32x512xf32>, vector<32x512xf32> -> vector<32x512xf32>
    %24 = arith.mulf %0, %23 : vector<32x512xf32>
    %c0_19 = arith.constant 0 : index
    %c0_20 = arith.constant 0 : index
    %25 = vector.load %arg8[%c0_19, %c0_20] : memref<32x512xf32, #tpu.memory_space<vmem>>, vector<32x512xf32>
    tpu.vector_store %arg8[%c0_19, %c0_20], %24 {strides = array<i32>} : memref<32x512xf32, #tpu.memory_space<vmem>>, vector<32x512xf32>,
    return
  }
  func.func @transform_0(%arg0: i32) -> (i32, i32) {
    %c0_i32 = arith.constant 0 : i32
    %c0_i32_0 = arith.constant 0 : i32
    return %arg0, %c0_i32 : i32, i32
  }
  func.func @transform_1(%arg0: i32) -> (i32, i32) {
    %c0_i32 = arith.constant 0 : i32
    %c0_i32_0 = arith.constant 0 : i32
    %c0_i32_1 = arith.constant 0 : i32
    return %c0_i32, %c0_i32_0 : i32, i32
  }
  func.func @transform_2(%arg0: i32) -> (i32, i32) {
    %c0_i32 = arith.constant 0 : i32
    %c0_i32_0 = arith.constant 0 : i32
    %c0_i32_1 = arith.constant 0 : i32
    return %c0_i32, %c0_i32_0 : i32, i32
  }
  func.func @transform_3(%arg0: i32) -> (i32, i32) {
    %c0_i32 = arith.constant 0 : i32
    %c0_i32_0 = arith.constant 0 : i32
    %c0_i32_1 = arith.constant 0 : i32
    return %c0_i32, %c0_i32_0 : i32, i32
  }
  func.func @transform_4(%arg0: i32) -> (i32, i32) {
    %c0_i32 = arith.constant 0 : i32
    %c0_i32_0 = arith.constant 0 : i32
    %c0_i32_1 = arith.constant 0 : i32
    return %c0_i32, %c0_i32_0 : i32, i32
  }
  func.func @transform_5(%arg0: i32) -> (i32, i32) {
    %c0_i32 = arith.constant 0 : i32
    %c0_i32_0 = arith.constant 0 : i32
    %c0_i32_1 = arith.constant 0 : i32
    return %c0_i32, %c0_i32_0 : i32, i32
  }
  func.func @transform_6(%arg0: i32) -> (i32, i32) {
    %c0_i32 = arith.constant 0 : i32
    %c0_i32_0 = arith.constant 0 : i32
    %c0_i32_1 = arith.constant 0 : i32
    return %c0_i32, %c0_i32_0 : i32, i32
  }
  func.func @transform_7(%arg0: i32) -> (i32, i32) {
    %c0_i32 = arith.constant 0 : i32
    %c0_i32_0 = arith.constant 0 : i32
    return %arg0, %c0_i32 : i32, i32
  }
}

</mosaic_0001>

<bundles_post_ra>
// kernel: tpu_custom_call.1
= control target key start
LH: loop header
LB: loop body
LE: loop exit
PB: predicated region body
PF: predicated region fallthrough
CT: control target
= control target key end

     0   :  { %s1152_s0 = inlined_call_operand.vmem [shape: f32[32,512], index: 0, kind: input, shape index: {}]   ;;  %s1153_s1 = inlined_call_operand.vmem [shape: f32[512,32], index: 1, kind: input, shape index: {}]   ;;  %s1154_s2 = inlined_call_operand.vmem [shape: f32[32,64], index: 2, kind: input, shape index: {}]   ;;  %s1155_s3 = inlined_call_operand.vmem [shape: f32[1,64], index: 3, kind: input, shape index: {}]   ;;  %s1156_s4 = inlined_call_operand.vmem [shape: f32[64,32], index: 4, kind: input, shape index: {}]   ;;  %s1157_s5 = inlined_call_operand.vmem [shape: f32[1,32], index: 5, kind: input, shape index: {}]   ;;  %s1158_s6 = inlined_call_operand.vmem [shape: f32[32,512], index: 6, kind: input, shape index: {}]   ;;  %s1159_s7 = inlined_call_operand.hbm [shape: f32[32,512], index: 7, kind: output, shape index: {}]  }
   0x1   :  { %v90_v0 = vld [vmem:[%s1153_s1 + $0x178] sm:$0xff]  ;;  %v89_v1 = vld [vmem:[%s1153_s1 + $0x170] sm:$0xff]  ;;  %v88_v5 = vld [vmem:[%s1153_s1 + $0x168] sm:$0xff] }
   0x2   :  { %v106_v2 = vld [vmem:[%s1153_s1 + $0x1f8] sm:$0xff]  ;;  %165 = vmatpush.msra.mxu2 %v90_v0  ;;  %v105_v6 = vld [vmem:[%s1153_s1 + $0x1f0] sm:$0xff]  ;;  %v104_v9 = vld [vmem:[%s1153_s1 + $0x1e8] sm:$0xff] }
   0x3   :  { %194 = vmatpush.msra.mxu3 %v106_v2  ;;  %v58_v3 = vld [vmem:[%s1153_s1 + $0x78] sm:$0xff]  ;;  %v57_v7 = vld [vmem:[%s1153_s1 + $0x70] sm:$0xff]  ;;  %v56_v10 = vld [vmem:[%s1153_s1 + $0x68] sm:$0xff] }
   0x4   :  { %v74_v4 = vld [vmem:[%s1153_s1 + $0xf8] sm:$0xff]  ;;  %107 = vmatpush.msra.mxu0 %v58_v3  ;;  %v73_v8 = vld [vmem:[%s1153_s1 + $0xf0] sm:$0xff]  ;;  %166 = vmatpush.msra.mxu2 %v89_v1  ;;  %v87_v11 = vld [vmem:[%s1153_s1 + $0x160] sm:$0xff] }
   0x5   :  { %136 = vmatpush.msra.mxu1 %v74_v4  ;;  %195 = vmatpush.msra.mxu3 %v105_v6  ;;  %v72_v12 = vld [vmem:[%s1153_s1 + $0xe8] sm:$0xff]  ;;  %v103_v13 = vld [vmem:[%s1153_s1 + $0x1e0] sm:$0xff]  ;;  %v86_v16 = vld [vmem:[%s1153_s1 + $0x158] sm:$0xff] }
   0x6   :  { %108 = vmatpush.msra.mxu0 %v57_v7  ;;  %167 = vmatpush.msra.mxu2 %v88_v5  ;;  %v55_v14 = vld [vmem:[%s1153_s1 + $0x60] sm:$0xff]  ;;  %v102_v17 = vld [vmem:[%s1153_s1 + $0x1d8] sm:$0xff]  ;;  %v85_v20 = vld [vmem:[%s1153_s1 + $0x150] sm:$0xff] }
   0x7   :  { %137 = vmatpush.msra.mxu1 %v73_v8  ;;  %196 = vmatpush.msra.mxu3 %v104_v9  ;;  %v71_v15 = vld [vmem:[%s1153_s1 + $0xe0] sm:$0xff]  ;;  %v54_v18 = vld [vmem:[%s1153_s1 + $0x58] sm:$0xff]  ;;  %v101_v21 = vld [vmem:[%s1153_s1 + $0x1d0] sm:$0xff] }
   0x8   :  { %109 = vmatpush.msra.mxu0 %v56_v10  ;;  %168 = vmatpush.msra.mxu2 %v87_v11  ;;  %v70_v19 = vld [vmem:[%s1153_s1 + $0xd8] sm:$0xff]  ;;  %v53_v22 = vld [vmem:[%s1153_s1 + $0x50] sm:$0xff]  ;;  %v84_v24 = vld [vmem:[%s1153_s1 + $0x148] sm:$0xff] }
   0x9   :  { %138 = vmatpush.msra.mxu1 %v72_v12  ;;  %197 = vmatpush.msra.mxu3 %v103_v13  ;;  %v69_v23 = vld [vmem:[%s1153_s1 + $0xd0] sm:$0xff]  ;;  %v100_v25 = vld [vmem:[%s1153_s1 + $0x1c8] sm:$0xff]  ;;  %v83_v28 = vld [vmem:[%s1153_s1 + $0x140] sm:$0xff] }
   0xa   :  { %110 = vmatpush.msra.mxu0 %v55_v14  ;;  %169 = vmatpush.msra.mxu2 %v86_v16  ;;  %v52_v26 = vld [vmem:[%s1153_s1 + $0x48] sm:$0xff]  ;;  %v99_v29 = vld [vmem:[%s1153_s1 + $0x1c0] sm:$0xff]  ;;  %v82_v32 = vld [vmem:[%s1153_s1 + $0x138] sm:$0xff] }
   0xb   :  { %139 = vmatpush.msra.mxu1 %v71_v15  ;;  %198 = vmatpush.msra.mxu3 %v102_v17  ;;  %v68_v27 = vld [vmem:[%s1153_s1 + $0xc8] sm:$0xff]  ;;  %v51_v30 = vld [vmem:[%s1153_s1 + $0x40] sm:$0xff]  ;;  %v98_v33 = vld [vmem:[%s1153_s1 + $0x1b8] sm:$0xff] }
   0xc   :  { %111 = vmatpush.msra.mxu0 %v54_v18  ;;  %170 = vmatpush.msra.mxu2 %v85_v20  ;;  %v67_v31 = vld [vmem:[%s1153_s1 + $0xc0] sm:$0xff]  ;;  %v50_v34 = vld [vmem:[%s1153_s1 + $0x38] sm:$0xff]  ;;  %v81_v36 = vld [vmem:[%s1153_s1 + $0x130] sm:$0xff] }
   0xd   :  { %140 = vmatpush.msra.mxu1 %v70_v19  ;;  %199 = vmatpush.msra.mxu3 %v101_v21  ;;  %v66_v35 = vld [vmem:[%s1153_s1 + $0xb8] sm:$0xff]  ;;  %v97_v37 = vld [vmem:[%s1153_s1 + $0x1b0] sm:$0xff]  ;;  %v80_v40 = vld [vmem:[%s1153_s1 + $0x128] sm:$0xff] }
   0xe   :  { %112 = vmatpush.msra.mxu0 %v53_v22  ;;  %171 = vmatpush.msra.mxu2 %v84_v24  ;;  %v49_v38 = vld [vmem:[%s1153_s1 + $0x30] sm:$0xff]  ;;  %v96_v41 = vld [vmem:[%s1153_s1 + $0x1a8] sm:$0xff]  ;;  %v79_v44 = vld [vmem:[%s1153_s1 + $0x120] sm:$0xff] }
   0xf   :  { %141 = vmatpush.msra.mxu1 %v69_v23  ;;  %200 = vmatpush.msra.mxu3 %v100_v25  ;;  %v65_v39 = vld [vmem:[%s1153_s1 + $0xb0] sm:$0xff]  ;;  %v48_v42 = vld [vmem:[%s1153_s1 + $0x28] sm:$0xff]  ;;  %v95_v45 = vld [vmem:[%s1153_s1 + $0x1a0] sm:$0xff] }
  0x10   :  { %113 = vmatpush.msra.mxu0 %v52_v26  ;;  %172 = vmatpush.msra.mxu2 %v83_v28  ;;  %v64_v43 = vld [vmem:[%s1153_s1 + $0xa8] sm:$0xff]  ;;  %v47_v46 = vld [vmem:[%s1153_s1 + $0x20] sm:$0xff]  ;;  %v78_v48 = vld [vmem:[%s1153_s1 + $0x118] sm:$0xff] }
  0x11   :  { %142 = vmatpush.msra.mxu1 %v68_v27  ;;  %201 = vmatpush.msra.mxu3 %v99_v29  ;;  %v63_v47 = vld [vmem:[%s1153_s1 + $0xa0] sm:$0xff]  ;;  %v94_v49 = vld [vmem:[%s1153_s1 + $0x198] sm:$0xff]  ;;  %v77_v52 = vld [vmem:[%s1153_s1 + $0x110] sm:$0xff] }
  0x12   :  { %114 = vmatpush.msra.mxu0 %v51_v30  ;;  %173 = vmatpush.msra.mxu2 %v82_v32  ;;  %v46_v50 = vld [vmem:[%s1153_s1 + $0x18] sm:$0xff]  ;;  %v93_v53 = vld [vmem:[%s1153_s1 + $0x190] sm:$0xff]  ;;  %v76_v56 = vld [vmem:[%s1153_s1 + $0x108] sm:$0xff] }
  0x13   :  { %143 = vmatpush.msra.mxu1 %v67_v31  ;;  %202 = vmatpush.msra.mxu3 %v98_v33  ;;  %v62_v51 = vld [vmem:[%s1153_s1 + $0x98] sm:$0xff]  ;;  %v45_v54 = vld [vmem:[%s1153_s1 + $0x10] sm:$0xff]  ;;  %v92_v57 = vld [vmem:[%s1153_s1 + $0x188] sm:$0xff] }
  0x14   :  { %115 = vmatpush.msra.mxu0 %v50_v34  ;;  %174 = vmatpush.msra.mxu2 %v81_v36  ;;  %v61_v55 = vld [vmem:[%s1153_s1 + $0x90] sm:$0xff]  ;;  %v44_v58 = vld [vmem:[%s1153_s1 + $0x8] sm:$0xff]  ;;  %v75_v60 = vld [vmem:[%s1153_s1 + $0x100] sm:$0xff] }
  0x15   :  { %144 = vmatpush.msra.mxu1 %v66_v35  ;;  %203 = vmatpush.msra.mxu3 %v97_v37  ;;  %v60_v59 = vld [vmem:[%s1153_s1 + $0x88] sm:$0xff]  ;;  %v91_v61 = vld [vmem:[%s1153_s1 + $0x180] sm:$0xff] }
  0x16   :  { %116 = vmatpush.msra.mxu0 %v49_v38  ;;  %175 = vmatpush.msra.mxu2 %v80_v40 }
  0x17   :  { %145 = vmatpush.msra.mxu1 %v65_v39  ;;  %204 = vmatpush.msra.mxu3 %v96_v41 }
  0x18   :  { %117 = vmatpush.msra.mxu0 %v48_v42  ;;  %176 = vmatpush.msra.mxu2 %v79_v44 }
  0x19   :  { %146 = vmatpush.msra.mxu1 %v64_v43  ;;  %205 = vmatpush.msra.mxu3 %v95_v45 }
  0x1a   :  { %118 = vmatpush.msra.mxu0 %v47_v46  ;;  %177 = vmatpush.msra.mxu2 %v78_v48 }
  0x1b   :  { %147 = vmatpush.msra.mxu1 %v63_v47  ;;  %206 = vmatpush.msra.mxu3 %v94_v49 }
  0x1c   :  { %119 = vmatpush.msra.mxu0 %v46_v50  ;;  %178 = vmatpush.msra.mxu2 %v77_v52 }
  0x1d   :  { %148 = vmatpush.msra.mxu1 %v62_v51  ;;  %207 = vmatpush.msra.mxu3 %v93_v53 }
  0x1e   :  { %120 = vmatpush.msra.mxu0 %v45_v54 }
  0x1f   :  { %149 = vmatpush.msra.mxu1 %v61_v55 }
  0x20   :  { %12 = vsyncpa [#allocation3], 0  ;;  %179 = vmatpush.msra.mxu2 %v76_v56  ;;  %208 = vmatpush.msra.mxu3 %v92_v57  ;;  %v924_v62 = vld [vmem:[%s1152_s0 + $0x10] sm:$0xff]  ;;  %v929_v63 = vld [vmem:[%s1152_s0 + $0x18] sm:$0xff]  ;;  %vm235_vm0 = vcmask 261120   ;;  %vm293_vm1 = vcmask 523264  }
  0x21   :  { %121 = vmatpush.msra.mxu0 %v44_v58  ;;  %150 = vmatpush.msra.mxu1 %v60_v59  ;;  %v43_v0 = vld [vmem:[%s1153_s1] sm:$0xff]  ;;  %v945_v3 = vld [vmem:[%s1152_s0 + $0x8] sm:$0xff]  ;;  %v230_v4 = vld [vmem:[%s1154_s2 + $0x18] sm:$0xff]  ;;  %s593_s27 = sshll.u32 %s1159_s7, 4  ;;  %s693_s28 = smov 512   ;;  %s594_s27 = int_to_ptr.hbm [resolvable:$true] %s593_s27 }
  0x22   :  { %v59_v1 = vld [vmem:[%s1153_s1 + $0x80] sm:$0xff]  ;;  %180 = vmatpush.msra.mxu2 %v75_v60  ;;  %209 = vmatpush.msra.mxu3 %v91_v61  ;;  %v229_v5 = vld [vmem:[%s1154_s2 + $0x10] sm:$0xff]  ;;  %v965_v7 = vld [vmem:[%s1152_s0 + $0x38] sm:$0xff] }
  0x23   :  { %v940_v2 = vld [vmem:[%s1152_s0] sm:$0xff]  ;;  %181 = vmatmul.f32.vlgmr.msra.gmra.mxu2 %v924_v62  ;;  %210 = vmatmul.f32.vlgmr.msra.gmra.mxu3 %v929_v63  ;;  %v960_v6 = vld [vmem:[%s1152_s0 + $0x30] sm:$0xff]  ;;  %v975_v9 = vld [vmem:[%s1152_s0 + $0x28] sm:$0xff] }
  0x24   :  { %122 = vmatpush.msra.mxu0 %v43_v0  ;;  %151 = vmatpush.msra.mxu1 %v59_v1  ;;  %v970_v8 = vld [vmem:[%s1152_s0 + $0x20] sm:$0xff]  ;;  %v984_v10 = vld [vmem:[%s1152_s0 + $0x50] sm:$0xff]  ;;  %v989_v11 = vld [vmem:[%s1152_s0 + $0x58] sm:$0xff] }
  0x25   :  { %123 = vmatmul.f32.vlgmr.msra.gmra.mxu0 %v940_v2  ;;  %152 = vmatmul.f32.vlgmr.msra.gmra.mxu1 %v945_v3  ;;  %v994_v12 = vld [vmem:[%s1152_s0 + $0x40] sm:$0xff]  ;;  %v999_v13 = vld [vmem:[%s1152_s0 + $0x48] sm:$0xff]  ;;  %v1008_v14 = vld [vmem:[%s1152_s0 + $0x70] sm:$0xff] }
  0x26   :  { %260 = vmatpush.msrb.mxu0 %v230_v4  ;;  %633 = vmatpush.msrb.mxu2 %v230_v4  ;;  %v1013_v15 = vld [vmem:[%s1152_s0 + $0x78] sm:$0xff]  ;;  %v1018_v16 = vld [vmem:[%s1152_s0 + $0x60] sm:$0xff]  ;;  %v1023_v17 = vld [vmem:[%s1152_s0 + $0x68] sm:$0xff]  ;;  %s694_s0 = smov 32  }
  0x27   :  { %v228_v18 = vld [vmem:[%s1154_s2 + $0x8] sm:$0xff]  ;;  %v227_v19 = vld [vmem:[%s1154_s2] sm:$0xff]  ;;  %v288_v23 = vld [vmem:[%s1156_s4 + $0x38] sm:$0xff] }
  0x28   :  { %261 = vmatpush.msrb.mxu0 %v229_v5  ;;  %634 = vmatpush.msrb.mxu2 %v229_v5  ;;  %v287_v24 = vld [vmem:[%s1156_s4 + $0x30] sm:$0xff]  ;;  %v286_v28 = vld [vmem:[%s1156_s4 + $0x28] sm:$0xff]  ;;  %v285_v30 = vld [vmem:[%s1156_s4 + $0x20] sm:$0xff] }
  0x29   :  { %314 = vmatpush.msrb.mxu1 %v288_v23  ;;  %637 = vmatpush.msrb.mxu3 %v288_v23  ;;  %v284_v35 = vld [vmem:[%s1156_s4 + $0x18] sm:$0xff]  ;;  %v283_v57 = vld [vmem:[%s1156_s4 + $0x10] sm:$0xff]  ;;  %v282_v58 = vld [vmem:[%s1156_s4 + $0x8] sm:$0xff] }
  0x2a   :  { %262 = vmatpush.msrb.mxu0 %v228_v18  ;;  %635 = vmatpush.msrb.mxu2 %v228_v18  ;;  %v281_v59 = vld [vmem:[%s1156_s4] sm:$0xff] }
  0x2b   :  { %184 = vmatmul.f32.gmra.mxu2 %v960_v6  ;;  %213 = vmatmul.f32.gmra.mxu3 %v965_v7  ;;  %v648_v60 = vld [vmem:[%s1155_s3] ss:$0 sm:$0xff] }
  0x2c   :  { %263 = vmatpush.msrb.mxu0 %v227_v19  ;;  %636 = vmatpush.msrb.mxu2 %v227_v19 }
  0x2d   :  { %126 = vmatmul.f32.gmra.mxu0 %v970_v8  ;;  %155 = vmatmul.f32.gmra.mxu1 %v975_v9 }
  0x2e   :  { %315 = vmatpush.msrb.mxu1 %v287_v24  ;;  %638 = vmatpush.msrb.mxu3 %v287_v24 }
  0x30   :  { %316 = vmatpush.msrb.mxu1 %v286_v28  ;;  %639 = vmatpush.msrb.mxu3 %v286_v28  ;;  %v426_v28 = vld [vmem:[%s1158_s6 + $0x78] sm:$0xff] }
  0x32   :  { %317 = vmatpush.msrb.mxu1 %v285_v30  ;;  %640 = vmatpush.msrb.mxu3 %v285_v30  ;;  %v420_v30 = vld [vmem:[%s1158_s6 + $0x48] sm:$0xff] }
  0x33   :  { %187 = vmatmul.f32.gmra.mxu2 %v984_v10  ;;  %216 = vmatmul.f32.gmra.mxu3 %v989_v11 }
  0x34   :  { %318 = vmatpush.msrb.mxu1 %v284_v35  ;;  %641 = vmatpush.msrb.mxu3 %v284_v35  ;;  %v417_v35 = vld [vmem:[%s1158_s6 + $0x30] sm:$0xff] }
  0x35   :  { %129 = vmatmul.f32.gmra.mxu0 %v994_v12  ;;  %158 = vmatmul.f32.gmra.mxu1 %v999_v13 }
  0x36   :  { %319 = vmatpush.msrb.mxu1 %v283_v57  ;;  %642 = vmatpush.msrb.mxu3 %v283_v57 }
  0x38   :  { %320 = vmatpush.msrb.mxu1 %v282_v58  ;;  %643 = vmatpush.msrb.mxu3 %v282_v58 }
  0x3a   :  { %321 = vmatpush.msrb.mxu1 %v281_v59  ;;  %644 = vmatpush.msrb.mxu3 %v281_v59 }
  0x3b   :  { %190 = vmatmul.f32.gmra.mxu2 %v1008_v14  ;;  %219 = vmatmul.f32.gmra.mxu3 %v1013_v15 }
  0x3c   :  { %538 = vmatpush.msra.mxu1 %v426_v28 }
  0x3d   :  { %132 = vmatmul.f32.gmra.mxu0 %v1018_v16  ;;  %161 = vmatmul.f32.gmra.mxu1 %v1023_v17 }
  0xa2   :  { %v124_v20 = vpop.f32.mrf.mxu0  ;;  %v153_v21 = vpop.f32.mrf.mxu1 }
  0xa3   :  { %v154_v22 = vadd.f32 %v153_v21, %v124_v20 }
  0xa6   :  { %v182_v25 = vpop.f32.mrf.mxu2  ;;  %v211_v26 = vpop.f32.mrf.mxu3 }
  0xa7   :  { %v183_v27 = vadd.f32 %v182_v25, %v154_v22  ;;  %v423_v25 = vld [vmem:[%s1158_s6 + $0x60] sm:$0xff] }
  0xa8   :  { %451 = vmatpush.msra.mxu2 %v423_v25 }
  0xa9   :  { %v212_v29 = vadd.f32 %v211_v26, %v183_v27  ;;  %v424_v26 = vld [vmem:[%s1158_s6 + $0x68] sm:$0xff]  ;;  %v425_v27 = vld [vmem:[%s1158_s6 + $0x70] sm:$0xff] }
  0xaa   :  { %v127_v31 = vpop.f32.mrf.mxu0  ;;  %v156_v32 = vpop.f32.mrf.mxu1  ;;  %480 = vmatpush.msra.mxu3 %v424_v26  ;;  %509 = vmatpush.msra.mxu0 %v425_v27 }
  0xab   :  { %v223_v33 = vmul.f32 0.0625, %v212_v29  ;;  %v157_v34 = vadd.f32 %v156_v32, %v127_v31  ;;  %v419_v29 = vld [vmem:[%s1158_s6 + $0x40] sm:$0xff]  ;;  %v421_v31 = vld [vmem:[%s1158_s6 + $0x50] sm:$0xff]  ;;  %v422_v32 = vld [vmem:[%s1158_s6 + $0x58] sm:$0xff] }
  0xac   :  { %452 = vmatpush.msra.mxu2 %v419_v29  ;;  %481 = vmatpush.msra.mxu3 %v420_v30 }
  0xad   :  { %605 = vmatmul.msk.f32.vlgmr.msrb.gmra.mxu0 %vm235_vm0, %v223_v33  ;;  %539 = vmatpush.msra.mxu1 %v422_v32  ;;  %v415_v33 = vld [vmem:[%s1158_s6 + $0x20] sm:$0xff] }
  0xae   :  { %v185_v36 = vpop.f32.mrf.mxu2  ;;  %v214_v37 = vpop.f32.mrf.mxu3  ;;  %510 = vmatpush.msra.mxu0 %v421_v31  ;;  %453 = vmatpush.msra.mxu2 %v415_v33 }
  0xaf   :  { %v186_v38 = vadd.f32 %v185_v36, %v157_v34  ;;  %v416_v34 = vld [vmem:[%s1158_s6 + $0x28] sm:$0xff]  ;;  %v649_v36 = vld [vmem:[%s1157_s5] ss:$0 sm:$0xff] }
  0xb0   :  { %482 = vmatpush.msra.mxu3 %v416_v34  ;;  %511 = vmatpush.msra.mxu0 %v417_v35 }
  0xb1   :  { %v215_v39 = vadd.f32 %v214_v37, %v186_v38  ;;  %v418_v37 = vld [vmem:[%s1158_s6 + $0x38] sm:$0xff]  ;;  %v411_v38 = vld [vmem:[%s1158_s6] sm:$0xff] }
  0xb2   :  { %v130_v40 = vpop.f32.mrf.mxu0  ;;  %v159_v41 = vpop.f32.mrf.mxu1  ;;  %540 = vmatpush.msra.mxu1 %v418_v37  ;;  %454 = vmatpush.msra.mxu2 %v411_v38 }
  0xb3   :  { %v224_v42 = vmul.f32 0.0625, %v215_v39  ;;  %v160_v43 = vadd.f32 %v159_v41, %v130_v40  ;;  %v412_v39 = vld [vmem:[%s1158_s6 + $0x8] sm:$0xff]  ;;  %v413_v40 = vld [vmem:[%s1158_s6 + $0x10] sm:$0xff]  ;;  %v414_v41 = vld [vmem:[%s1158_s6 + $0x18] sm:$0xff]  ;;  %s692_s6 = smov [#allocation2]  }
  0xb4   :  { %483 = vmatpush.msra.mxu3 %v412_v39  ;;  %512 = vmatpush.msra.mxu0 %v413_v40  ;;  %s591_s24 = sshll.u32 %s692_s6, 4  ;;  %s592_s24 = int_to_ptr.vmem [resolvable:$true] %s591_s24 }
  0xb5   :  { %606 = vmatmul.msk.f32.gmra.mxu0 %vm235_vm0, %v224_v42  ;;  %541 = vmatpush.msra.mxu1 %v414_v41 }
  0xb6   :  { %v188_v44 = vpop.f32.mrf.mxu2  ;;  %v217_v45 = vpop.f32.mrf.mxu3 }
  0xb7   :  { %v189_v46 = vadd.f32 %v188_v44, %v160_v43 }
  0xb9   :  { %v218_v47 = vadd.f32 %v217_v45, %v189_v46 }
  0xba   :  { %v133_v48 = vpop.f32.mrf.mxu0  ;;  %v162_v49 = vpop.f32.mrf.mxu1 }
  0xbb   :  { %v225_v50 = vmul.f32 0.0625, %v218_v47  ;;  %v163_v51 = vadd.f32 %v162_v49, %v133_v48 }
  0xbd   :  { %607 = vmatmul.msk.f32.vlgmr.msrb.gmra.mxu2 %vm235_vm0, %v225_v50 }
  0xbe   :  { %v191_v52 = vpop.f32.mrf.mxu2  ;;  %v220_v53 = vpop.f32.mrf.mxu3 }
  0xbf   :  { %v192_v54 = vadd.f32 %v191_v52, %v163_v51 }
  0xc1   :  { %v221_v55 = vadd.f32 %v220_v53, %v192_v54 }
  0xc3   :  { %v226_v56 = vmul.f32 0.0625, %v221_v55 }
  0xc5   :  { %608 = vmatmul.msk.f32.gmra.mxu2 %vm235_vm0, %v226_v56 }
 0x12a   :  { %v265_v61 = vpop.f32.mrf.mxu0 }
 0x12b   :  { %v266_v0 = vadd.f32 %v648_v60, %v265_v61 }
 0x12d   :  { %v277_v1 = vmax.f32 %v266_v0, 0.0 }
 0x12f   :  { %609 = vmatmul.msk.f32.vlgmr.msrb.gmra.mxu1 %vm293_vm1, %v277_v1 }
 0x132   :  { %v268_v4 = vpop.f32.mrf.mxu0 }
 0x133   :  { %v269_v5 = vadd.f32 %v648_v60, %v268_v4 }
 0x135   :  { %v278_v18 = vmax.f32 %v269_v5, 0.0 }
 0x137   :  { %610 = vmatmul.msk.f32.gmra.mxu1 %vm293_vm1, %v278_v18 }
 0x140   :  { %v271_v19 = vpop.f32.mrf.mxu2 }
 0x141   :  { %v272_v20 = vadd.f32 %v648_v60, %v271_v19 }
 0x143   :  { %v279_v21 = vmax.f32 %v272_v20, 0.0 }
 0x145   :  { %611 = vmatmul.msk.f32.vlgmr.msrb.gmra.mxu3 %vm293_vm1, %v279_v21 }
 0x148   :  { %v274_v22 = vpop.f32.mrf.mxu2 }
 0x149   :  { %v275_v23 = vadd.f32 %v648_v60, %v274_v22 }
 0x14b   :  { %v280_v24 = vmax.f32 %v275_v23, 0.0 }
 0x14d   :  { %612 = vmatmul.msk.f32.gmra.mxu3 %vm293_vm1, %v280_v24 }
 0x1ac   :  { %v323_v42 = vpop.f32.mrf.mxu1 }
 0x1ad   :  { %v324_v43 = vadd.f32 %v649_v36, %v323_v42 }
 0x1af   :  { %v613_v44 = vmul.f32 -1.442695, %v324_v43 }
 0x1b1   :  { %650 = vpow2.f32 %v613_v44 }
 0x1b4   :  { %v326_v45 = vpop.f32.mrf.mxu1 }
 0x1b5   :  { %v327_v46 = vadd.f32 %v649_v36, %v326_v45 }
 0x1b7   :  { %v651_v47 = vpop.eup %650  ;;  %v614_v48 = vmul.f32 -1.442695, %v327_v46 }
 0x1b8   :  { %v347_v49 = vadd.f32 1.0, %v651_v47 }
 0x1b9   :  { %652 = vpow2.f32 %v614_v48 }
 0x1ba   :  { %654 = vrcp.f32 %v347_v49  ;;  %v362_v55 = vand.u32 2147483648, %v347_v49  ;;  %v360_v57 = vand.u32 2147483647, %v347_v49  ;;  %vm356_vm3 = vweird.f32 %v347_v49 }
 0x1bc   :  { %v363_v61 = vor.u32 1.1754944e-38, %v362_v55  ;;  %vm361_vm5 = vcmp.eq.f32.partialorder %v360_v57, 8.507059e+37 }
 0x1bf   :  { %v653_v50 = vpop.eup %652 }
 0x1c0   :  { %v655_v51 = vpop.eup %654  ;;  %v348_v52 = vadd.f32 1.0, %v653_v50 }
 0x1c1   :  { %v352_v53 = vmul.f32 %v655_v51, %v347_v49  ;;  %vm357_vm2 = vweird.f32 %v655_v51 }
 0x1c2   :  { %656 = vrcp.f32 %v348_v52  ;;  %vm358_vm4 = vmor %vm356_vm3, %vm357_vm2  ;;  %v377_v20 = vand.u32 2147483648, %v348_v52  ;;  %v375_v22 = vand.u32 2147483647, %v348_v52  ;;  %vm371_vm7 = vweird.f32 %v348_v52 }
 0x1c3   :  { %v353_v54 = vsub.f32 1.0, %v352_v53 }
 0x1c4   :  { %v378_v25 = vor.u32 1.1754944e-38, %v377_v20  ;;  %vm376_vm9 = vcmp.eq.f32.partialorder %v375_v22, 8.507059e+37 }
 0x1c5   :  { %v354_v56 = vmul.f32 %v655_v51, %v353_v54 }
 0x1c7   :  { %v355_v58 = vadd.f32 %v655_v51, %v354_v56 }
 0x1c8   :  { %v657_v59 = vpop.eup %656  ;;  %v329_v60 = vpop.f32.mrf.mxu3 }
 0x1c9   :  { %v330_v0 = vadd.f32 %v649_v36, %v329_v60  ;;  %v359_v1 = vsel %vm358_vm4, %v655_v51, %v355_v58  ;;  %v367_v4 = vmul.f32 %v657_v59, %v348_v52  ;;  %vm372_vm6 = vweird.f32 %v657_v59 }
 0x1ca   :  { %v364_v5 = vsel %vm361_vm5, %v363_v61, %v359_v1  ;;  %vm373_vm8 = vmor %vm371_vm7, %vm372_vm6 }
 0x1cb   :  { %v615_v18 = vmul.f32 -1.442695, %v330_v0  ;;  %617 = vmatmul.msk.f32.vlgmr.msra.gmra.mxu2 %vm235_vm0, %v364_v5  ;;  %621 = vmatmul.msk.f32.vlgmr.msra.gmra.mxu3 %vm235_vm0, %v364_v5  ;;  %v368_v19 = vsub.f32 1.0, %v367_v4 }
 0x1cc   :  { %625 = vmatmul.msk.f32.vlgmr.msra.gmra.mxu0 %vm235_vm0, %v364_v5  ;;  %629 = vmatmul.msk.f32.vlgmr.msra.gmra.mxu1 %vm235_vm0, %v364_v5 }
 0x1cd   :  { %658 = vpow2.f32 %v615_v18  ;;  %v369_v21 = vmul.f32 %v657_v59, %v368_v19 }
 0x1cf   :  { %v370_v23 = vadd.f32 %v657_v59, %v369_v21 }
 0x1d0   :  { %v332_v24 = vpop.f32.mrf.mxu3 }
 0x1d1   :  { %v333_v26 = vadd.f32 %v649_v36, %v332_v24  ;;  %v374_v27 = vsel %vm373_vm8, %v657_v59, %v370_v23 }
 0x1d2   :  { %v379_v28 = vsel %vm376_vm9, %v378_v25, %v374_v27 }
 0x1d3   :  { %v659_v29 = vpop.eup %658  ;;  %v616_v30 = vmul.f32 -1.442695, %v333_v26  ;;  %618 = vmatmul.msk.f32.gmra.mxu2 %vm235_vm0, %v379_v28  ;;  %622 = vmatmul.msk.f32.gmra.mxu3 %vm235_vm0, %v379_v28 }
 0x1d4   :  { %v349_v31 = vadd.f32 1.0, %v659_v29  ;;  %626 = vmatmul.msk.f32.gmra.mxu0 %vm235_vm0, %v379_v28  ;;  %630 = vmatmul.msk.f32.gmra.mxu1 %vm235_vm0, %v379_v28 }
 0x1d5   :  { %660 = vpow2.f32 %v616_v30 }
 0x1d6   :  { %662 = vrcp.f32 %v349_v31  ;;  %v392_v37 = vand.u32 2147483648, %v349_v31  ;;  %v390_v39 = vand.u32 2147483647, %v349_v31  ;;  %vm386_vm11 = vweird.f32 %v349_v31 }
 0x1d8   :  { %v393_v42 = vor.u32 1.1754944e-38, %v392_v37  ;;  %vm391_vm13 = vcmp.eq.f32.partialorder %v390_v39, 8.507059e+37 }
 0x1db   :  { %v661_v32 = vpop.eup %660 }
 0x1dc   :  { %v663_v33 = vpop.eup %662  ;;  %v350_v34 = vadd.f32 1.0, %v661_v32 }
 0x1dd   :  { %v382_v35 = vmul.f32 %v663_v33, %v349_v31  ;;  %vm387_vm10 = vweird.f32 %v663_v33 }
 0x1de   :  { %664 = vrcp.f32 %v350_v34  ;;  %vm388_vm12 = vmor %vm386_vm11, %vm387_vm10  ;;  %v407_v47 = vand.u32 2147483648, %v350_v34  ;;  %v405_v49 = vand.u32 2147483647, %v350_v34  ;;  %vm401_vm15 = vweird.f32 %v350_v34 }
 0x1df   :  { %v383_v36 = vsub.f32 1.0, %v382_v35 }
 0x1e0   :  { %v408_v51 = vor.u32 1.1754944e-38, %v407_v47  ;;  %vm406_vm2 = vcmp.eq.f32.partialorder %v405_v49, 8.507059e+37 }
 0x1e1   :  { %v384_v38 = vmul.f32 %v663_v33, %v383_v36 }
 0x1e3   :  { %v385_v40 = vadd.f32 %v663_v33, %v384_v38 }
 0x1e4   :  { %v665_v41 = vpop.eup %664 }
 0x1e5   :  { %v389_v43 = vsel %vm388_vm12, %v663_v33, %v385_v40  ;;  %v397_v44 = vmul.f32 %v665_v41, %v350_v34  ;;  %vm402_vm14 = vweird.f32 %v665_v41 }
 0x1e6   :  { %v394_v45 = vsel %vm391_vm13, %v393_v42, %v389_v43  ;;  %vm403_vm1 = vmor %vm401_vm15, %vm402_vm14 }
 0x1e7   :  { %619 = vmatmul.msk.f32.gmra.mxu2 %vm235_vm0, %v394_v45  ;;  %623 = vmatmul.msk.f32.gmra.mxu3 %vm235_vm0, %v394_v45  ;;  %v398_v46 = vsub.f32 1.0, %v397_v44 }
 0x1e8   :  { %627 = vmatmul.msk.f32.gmra.mxu0 %vm235_vm0, %v394_v45  ;;  %631 = vmatmul.msk.f32.gmra.mxu1 %vm235_vm0, %v394_v45 }
 0x1e9   :  { %v399_v48 = vmul.f32 %v665_v41, %v398_v46 }
 0x1eb   :  { %v400_v50 = vadd.f32 %v665_v41, %v399_v48 }
 0x1ed   :  { %v404_v52 = vsel %vm403_vm1, %v665_v41, %v400_v50 }
 0x1ee   :  { %v409_v53 = vsel %vm406_vm2, %v408_v51, %v404_v52 }
 0x1ef   :  { %620 = vmatmul.msk.f32.gmra.mxu2 %vm235_vm0, %v409_v53  ;;  %624 = vmatmul.msk.f32.gmra.mxu3 %vm235_vm0, %v409_v53 }
 0x1f0   :  { %628 = vmatmul.msk.f32.gmra.mxu0 %vm235_vm0, %v409_v53  ;;  %632 = vmatmul.msk.f32.gmra.mxu1 %vm235_vm0, %v409_v53 }
 0x249   :  { %v514_v54 = vpop.f32.mrf.mxu0  ;;  %v543_v55 = vpop.f32.mrf.mxu1 }
 0x24a   :  { %v557_v56 = vmul.f32 %v514_v54, %v924_v62  ;;  %v558_v57 = vmul.f32 %v543_v55, %v929_v63 }
 0x24c   :  { %573 = vst [vmem:[#allocation2 + $0x10] sm:$0xff] %v557_v56 }
 0x24d   :  { %574 = vst [vmem:[#allocation2 + $0x18] sm:$0xff] %v558_v57 }
 0x24e   :  { %v456_v58 = vpop.f32.mrf.mxu2  ;;  %v485_v59 = vpop.f32.mrf.mxu3 }
 0x24f   :  { %v555_v60 = vmul.f32 %v456_v58, %v940_v2  ;;  %v556_v61 = vmul.f32 %v485_v59, %v945_v3 }
 0x251   :  { %571 = vst [vmem:[#allocation2] sm:$0xff] %v555_v60  ;;  %v517_v0 = vpop.f32.mrf.mxu0  ;;  %v546_v1 = vpop.f32.mrf.mxu1 }
 0x252   :  { %572 = vst [vmem:[#allocation2 + $0x8] sm:$0xff] %v556_v61  ;;  %v561_v4 = vmul.f32 %v517_v0, %v960_v6  ;;  %v562_v5 = vmul.f32 %v546_v1, %v965_v7 }
 0x254   :  { %577 = vst [vmem:[#allocation2 + $0x30] sm:$0xff] %v561_v4 }
 0x255   :  { %578 = vst [vmem:[#allocation2 + $0x38] sm:$0xff] %v562_v5 }
 0x256   :  { %v459_v62 = vpop.f32.mrf.mxu2  ;;  %v488_v63 = vpop.f32.mrf.mxu3 }
 0x257   :  { %v559_v18 = vmul.f32 %v459_v62, %v970_v8  ;;  %v560_v19 = vmul.f32 %v488_v63, %v975_v9 }
 0x259   :  { %575 = vst [vmem:[#allocation2 + $0x20] sm:$0xff] %v559_v18 }
 0x25a   :  { %576 = vst [vmem:[#allocation2 + $0x28] sm:$0xff] %v560_v19 }
 0x265   :  { %v520_v2 = vpop.f32.mrf.mxu0  ;;  %v549_v3 = vpop.f32.mrf.mxu1 }
 0x266   :  { %v565_v20 = vmul.f32 %v520_v2, %v984_v10  ;;  %v566_v21 = vmul.f32 %v549_v3, %v989_v11 }
 0x268   :  { %581 = vst [vmem:[#allocation2 + $0x50] sm:$0xff] %v565_v20 }
 0x269   :  { %582 = vst [vmem:[#allocation2 + $0x58] sm:$0xff] %v566_v21 }
 0x26a   :  { %v462_v6 = vpop.f32.mrf.mxu2  ;;  %v491_v7 = vpop.f32.mrf.mxu3 }
 0x26b   :  { %v563_v22 = vmul.f32 %v462_v6, %v994_v12  ;;  %v564_v23 = vmul.f32 %v491_v7, %v999_v13 }
 0x26d   :  { %579 = vst [vmem:[#allocation2 + $0x40] sm:$0xff] %v563_v22  ;;  %v523_v8 = vpop.f32.mrf.mxu0  ;;  %v552_v24 = vpop.f32.mrf.mxu1 }
 0x26e   :  { %580 = vst [vmem:[#allocation2 + $0x48] sm:$0xff] %v564_v23  ;;  %v569_v9 = vmul.f32 %v523_v8, %v1008_v14  ;;  %v570_v25 = vmul.f32 %v552_v24, %v1013_v15 }
 0x270   :  { %585 = vst [vmem:[#allocation2 + $0x70] sm:$0xff] %v569_v9 }
 0x271   :  { %586 = vst [vmem:[#allocation2 + $0x78] sm:$0xff] %v570_v25 }
 0x272   :  { %v465_v10 = vpop.f32.mrf.mxu2  ;;  %v494_v11 = vpop.f32.mrf.mxu3 }
 0x273   :  { %v567_v12 = vmul.f32 %v465_v10, %v1018_v16  ;;  %v568_v13 = vmul.f32 %v494_v11, %v1023_v17 }
 0x275   :  { %583 = vst [vmem:[#allocation2 + $0x60] sm:$0xff] %v567_v12 }
 0x276   :  { %584 = vst [vmem:[#allocation2 + $0x68] sm:$0xff] %v568_v13 }
 0x277   :  { %599 = dma.vmem_to_hbm [thread:$0]  %s592_s24, 2048, %s594_s27, [#allocation3], %s693_s28, %s693_s28, %s694_s0  }
 0x278   :  { %690 = dma.done.wait [#allocation3], 2048  }
 0x279   :  { %691 = vsyncadd [#allocation3], 4294965248 }
 0x27a   :  { %604 = vsyncpa [#allocation3], 1 }

</bundles_post_ra>
